<compile_context>
chip_gen: v6e
topology: v6e:2x2x1
jax: 0.10.0
libtpu: 0.0.40
codegen_flags: <defaults>
</compile_context>

<pallas_src>
import math
import functools

import numpy as np
import jax
import jax.numpy as jnp
from jax import lax
from jax.experimental import pallas as pl
from jax.experimental.pallas import tpu as pltpu


def _round_up(n, m):
    return ((n + m - 1) // m) * m


def _cdiv(a, b):
    return (a + b - 1) // b


# ---------------------------------------------------------------------------
# Kernel
# ---------------------------------------------------------------------------
def _clip_text_classifier_kernel(scale_ref, x_ref, tf_ref, out_ref, *,
                                 num_classes):
    # scale_ref: SMEM (1,)              f32  raw logit_scale parameter
    # x_ref:     VMEM (block_b, D)      f32  input features (batch tile)
    # tf_ref:    VMEM (D, c_pad)        bf16 text features (constant block)
    # out_ref:   VMEM (block_b, c_pad)  out_dtype class probabilities

    x = x_ref[...].astype(jnp.float32)

    # x / ||x|| folded together with logit_scale.exp():
    #   exp(s) * (x/||x||) @ tf  ==  (x * (exp(s) * rsqrt(sum x^2))) @ tf
    # rsqrt + exp run on the EUP (separate VLIW slot -> effectively free), and
    # the scale multiplies a (block_b, 1) column instead of the (block_b, C)
    # logits tile.
    sumsq = jnp.sum(x * x, axis=1, keepdims=True)                 # (block_b, 1)
    logit_scale = jnp.exp(jnp.full((1, 1), scale_ref[0], dtype=jnp.float32))
    row_scale = logit_scale * lax.rsqrt(sumsq)                    # (block_b, 1)

    # bf16 operands, f32 accumulation -> native MXU throughput.
    x_n = (x * row_scale).astype(jnp.bfloat16)
    logits = jnp.dot(x_n, tf_ref[...], preferred_element_type=jnp.float32)

    # Mask padded class columns (classes padded to a multiple of 128 lanes).
    c_pad = logits.shape[-1]
    if num_classes < c_pad:
        col = lax.broadcasted_iota(jnp.int32, logits.shape, 1)
        logits = jnp.where(col < num_classes, logits, -jnp.inf)

    # F.softmax(x, dim=1) (eval mode). Exact divide: rows sum to 1 to f32
    # accuracy and the divide is hidden under the HBM bound.
    m = jnp.max(logits, axis=1, keepdims=True)
    e = jnp.exp(logits - m)
    denom = jnp.sum(e, axis=1, keepdims=True)
    out_ref[...] = (e / denom).astype(out_ref.dtype)


# ---------------------------------------------------------------------------
# Planning helpers (plain Python, outside jit)
# ---------------------------------------------------------------------------
def _vmem_limit_bytes():
    # Scoped VMEM budget: 3/4 of physical, capped well below v5e/v6e's 128 MiB.
    try:
        cap = int(pltpu.get_tpu_info().vmem_capacity_bytes)
    except Exception:
        cap = 64 * 1024 * 1024  # conservative (v7x per-TensorCore VMEM)
    return min((cap * 3) // 4, 112 * 1024 * 1024)


def _plan_block_b(B, D, c_pad, requested_block_b, out_itemsize, vmem_limit):
    eff = min(_round_up(requested_block_b, 8), _round_up(B, 8))

    # v7x has 2 TensorCores per chip: make sure the "parallel" batch grid has
    # >= 2 steps whenever the batch permits it (harmless extra step on v5e/v6e).
    while B > 8 and eff > 8 and _cdiv(B, eff) < 2:
        eff = _round_up(eff // 2, 8)

    # Keep double-buffered tiles + resident bf16 text features + f32 softmax
    # intermediates inside the scoped VMEM budget (matters on v7x's 64 MiB).
    def est(bb):
        return (2 * bb * D * 4                    # x tiles (double-buffered)
                + 2 * bb * c_pad * out_itemsize   # output tiles
                + 2 * D * c_pad * 2               # bf16 text features
                + 2 * bb * c_pad * 4)             # logits / exp f32 temps

    while eff > 8 and est(eff) > (vmem_limit * 8) // 10:
        eff = _round_up(eff // 2, 8)
    return eff


# ---------------------------------------------------------------------------
# Host-facing wrappers
# ---------------------------------------------------------------------------
def prepare_text_features(text_features):
    """One-time constant prep: cast to bf16 and pad classes to a multiple of
    128 lanes. Call once and cache/reuse the result across classifier calls
    (halves the dominant constant HBM transfer and removes a per-call cast)."""
    D, C = text_features.shape
    c_pad = _round_up(C, 128)
    tf = text_features.astype(jnp.bfloat16)
    if c_pad != C:
        tf = jnp.pad(tf, ((0, 0), (0, c_pad - C)))
    return tf


@functools.partial(
    jax.jit,
    static_argnames=("num_classes", "block_b", "vmem_limit_bytes", "out_dtype"))
def _clip_text_classifier_call(x, tf, logit_scale, *, num_classes, block_b,
                               vmem_limit_bytes, out_dtype):
    B, D = x.shape
    D2, c_pad = tf.shape
    assert D == D2
    out_itemsize = np.dtype(out_dtype).itemsize

    cost = pl.CostEstimate(
        flops=2 * B * D * c_pad,
        transcendentals=B * c_pad + 2 * B,     # softmax exp + rsqrt/recip-ish
        bytes_accessed=B * D * 4 + D * c_pad * 2 + B * c_pad * out_itemsize + 4,
    )

    out = pl.pallas_call(
        functools.partial(_clip_text_classifier_kernel, num_classes=num_classes),
        out_shape=jax.ShapeDtypeStruct((B, c_pad), out_dtype),
        grid_spec=pl.GridSpec(
            grid=(_cdiv(B, block_b),),
            in_specs=[
                # raw scalar logit_scale parameter, lives in SMEM
                pl.BlockSpec(memory_space=pltpu.MemorySpace.SMEM),
                # batch-tiled input features (ragged last block handled by Pallas)
                pl.BlockSpec((block_b, D), lambda i: (i, 0)),
                # full text-feature matrix; constant block index -> fetched once
                # and reused across the batch grid.
                # TODO(synk): pipeline_mode=pl.Buffered(1) would single-buffer
                # this constant block and free D*c_pad*2 bytes of VMEM on v7x.
                pl.BlockSpec((D, c_pad), lambda i: (0, 0)),
            ],
            out_specs=pl.BlockSpec((block_b, c_pad), lambda i: (i, 0)),
        ),
        compiler_params=pltpu.CompilerParams(
            dimension_semantics=("parallel",),   # megacore-shardable batch axis
            vmem_limit_bytes=vmem_limit_bytes,
        ),
        cost_estimate=cost,
    )(logit_scale, x, tf)

    if num_classes != c_pad:
        out = out[:, :num_classes]
    return out


def clip_text_classifier(x, text_features_prepped, logit_scale, *,
                         num_classes=None, block_b=512,
                         out_dtype=jnp.bfloat16):
    """x: (B, D) f32; text_features_prepped: output of prepare_text_features()
    (bf16, (D, c_pad)); logit_scale: (1,) f32 raw parameter."""
    B, D = x.shape
    D2, c_pad = text_features_prepped.shape
    assert D == D2
    if num_classes is None:
        num_classes = c_pad
    vmem_limit = _vmem_limit_bytes()
    eff_block_b = _plan_block_b(B, D, c_pad, block_b,
                                np.dtype(out_dtype).itemsize, vmem_limit)
    return _clip_text_classifier_call(
        x, text_features_prepped, logit_scale,
        num_classes=num_classes, block_b=eff_block_b,
        vmem_limit_bytes=vmem_limit, out_dtype=out_dtype)


def _reference(x, text_features, logit_scale):
    x_n = x / jnp.linalg.norm(x, axis=1, keepdims=True)
    logits = jnp.exp(logit_scale[0]) * (x_n @ text_features)
    return jax.nn.softmax(logits, axis=1)


if __name__ == "__main__":
    # Small, deterministic synthetic setup (stands in for the precomputed CLIP
    # text-encoder buffer; no checkpoint is loaded). Non-aligned B and C
    # exercise the ragged-last-block and class-mask paths.
    B, D, C = 12, 128, 96  # batch, embed_dim, num_classes

    key = jax.random.PRNGKey(0)
    kx, kt = jax.random.split(key)

    x = jax.random.normal(kx, (B, D), dtype=jnp.float32)

    # text_features buffer: (embed_dim, num_classes), L2-normalized along dim=0,
    # exactly as produced by get_text_features().
    tf_raw = jax.random.normal(kt, (D, C), dtype=jnp.float32)
    text_features = tf_raw / jnp.linalg.norm(tf_raw, axis=0, keepdims=True)

    # CLIP's standard logit_scale init: ln(1/0.07)
    logit_scale = jnp.array([math.log(1.0 / 0.07)], dtype=jnp.float32)

    # One-time constant prep (cache this across calls in real inference).
    tf_prepped = jax.block_until_ready(prepare_text_features(text_features))

    out = clip_text_classifier(x, tf_prepped, logit_scale, num_classes=C)
    out = jax.block_until_ready(out)

    ref = _reference(x, text_features, logit_scale)
    assert out.shape == (B, C)

    out_f32 = out.astype(jnp.float32)
    # bf16 MXU operands + bf16 output -> loosened tolerance on probabilities.
    assert jnp.allclose(out_f32, ref, atol=2e-2, rtol=0.0), (
        float(jnp.max(jnp.abs(out_f32 - ref))))
    # Rows must still (approximately) sum to 1 (exact divide in-kernel; the
    # residual error is bf16 output quantization).
    assert jnp.allclose(jnp.sum(out_f32, axis=1), 1.0, atol=5e-3)

    # TODO(synk): vpt=True branch (VideoSpecificPrompt cross-attention over
    # image features) and the optional class bias are not exercised by the
    # default constructor args and are omitted here.
    print("KERNEL_OK")
</pallas_src>

<mosaic_0001>
module attributes {stable_mosaic.version = 11 : i64} {
  func.func @_clip_text_classifier_kernel(%arg0: i32, %arg1: memref<1xf32, #tpu.memory_space<smem>>, %arg2: memref<8x128xf32, #tpu.memory_space<vmem>>, %arg3: memref<128x128xbf16, #tpu.memory_space<vmem>>, %arg4: memref<8x128xbf16, #tpu.memory_space<vmem>>) attributes {dimension_semantics = [#tpu.dimension_semantics<parallel>], iteration_bounds = array<i64: 2>, scalar_prefetch = 0 : i64, scratch_operands = 0 : i64, tpu.core_type = #tpu.core_type<tc>, window_params = [{transform_indices = @transform_0, window_bounds = array<i64: 1>}, {transform_indices = @transform_1, window_bounds = array<i64: 8, 128>}, {pipeline_mode = #tpu.pipeline_mode<synchronous>, transform_indices = @transform_2, window_bounds = array<i64: 128, 128>}, {transform_indices = @transform_3, window_bounds = array<i64: 8, 128>}]} {
    %c0 = arith.constant 0 : index
    %c0_0 = arith.constant 0 : index
    %0 = vector.load %arg2[%c0, %c0_0] : memref<8x128xf32, #tpu.memory_space<vmem>>, vector<8x128xf32>
    %1 = arith.mulf %0, %0 : vector<8x128xf32>
    %cst = arith.constant dense<0.000000e+00> : vector<8xf32>
    %2 = vector.multi_reduction <add>, %1, %cst [1] : vector<8x128xf32> to vector<8xf32>
    %3 = vector.shape_cast %2 : vector<8xf32> to vector<8x1xf32>
    %c0_1 = arith.constant 0 : index
    %4 = memref.load %arg1[%c0_1] : memref<1xf32, #tpu.memory_space<smem>>
    %5 = vector.broadcast %4 : f32 to vector<1x1xf32>
    %6 = math.exp %5 : vector<1x1xf32>
    %7 = math.rsqrt %3 : vector<8x1xf32>
    %8 = vector.broadcast %6 : vector<1x1xf32> to vector<8x1xf32>
    %9 = arith.mulf %8, %7 : vector<8x1xf32>
    %10 = vector.broadcast %9 : vector<8x1xf32> to vector<8x128xf32>
    %11 = arith.mulf %0, %10 : vector<8x128xf32>
    %12 = arith.truncf %11 : vector<8x128xf32> to vector<8x128xbf16>
    %c0_2 = arith.constant 0 : index
    %c0_3 = arith.constant 0 : index
    %13 = vector.load %arg3[%c0_2, %c0_3] : memref<128x128xbf16, #tpu.memory_space<vmem>>, vector<128x128xbf16>
    %cst_4 = arith.constant dense<0.000000e+00> : vector<8x128xf32>
    %14 = tpu.matmul %12, %13, %cst_4 {dimension_numbers = #tpu.dot_dimension_numbers<[1], [0], [0], [1], [0, 0, 1, 1], [], []>} : vector<8x128xbf16>, vector<128x128xbf16>, vector<8x128xf32> -> vector<8x128xf32>
    %15 = tpu.iota {dimensions = array<i32: 1>} : vector<8x128xi32>
    %c96_i32 = arith.constant 96 : i32
    %16 = vector.broadcast %c96_i32 : i32 to vector<8x128xi32>
    %17 = arith.cmpi slt, %15, %16 : vector<8x128xi32>
    %cst_5 = arith.constant 0xFF800000 : f32
    %18 = vector.broadcast %cst_5 : f32 to vector<8x128xf32>
    %19 = arith.select %17, %14, %18 : vector<8x128xi1>, vector<8x128xf32>
    %cst_6 = arith.constant dense<0xFF800000> : vector<8xf32>
    %20 = vector.multi_reduction <maximumf>, %19, %cst_6 [1] : vector<8x128xf32> to vector<8xf32>
    %21 = vector.shape_cast %20 : vector<8xf32> to vector<8x1xf32>
    %22 = vector.broadcast %21 : vector<8x1xf32> to vector<8x128xf32>
    %23 = arith.subf %19, %22 : vector<8x128xf32>
    %24 = math.exp %23 : vector<8x128xf32>
    %cst_7 = arith.constant dense<0.000000e+00> : vector<8xf32>
    %25 = vector.multi_reduction <add>, %24, %cst_7 [1] : vector<8x128xf32> to vector<8xf32>
    %26 = vector.shape_cast %25 : vector<8xf32> to vector<8x1xf32>
    %27 = vector.broadcast %26 : vector<8x1xf32> to vector<8x128xf32>
    %28 = arith.divf %24, %27 : vector<8x128xf32>
    %29 = arith.truncf %28 : vector<8x128xf32> to vector<8x128xbf16>
    %c0_8 = arith.constant 0 : index
    %c0_9 = arith.constant 0 : index
    %30 = vector.load %arg4[%c0_8, %c0_9] : memref<8x128xbf16, #tpu.memory_space<vmem>>, vector<8x128xbf16>
    tpu.vector_store %arg4[%c0_8, %c0_9], %29 {strides = array<i32>} : memref<8x128xbf16, #tpu.memory_space<vmem>>, vector<8x128xbf16>,
    return
  }
  func.func @transform_0(%arg0: i32) -> i32 {
    %c0_i32 = arith.constant 0 : i32
    %c0_i32_0 = arith.constant 0 : i32
    return %c0_i32 : i32
  }
  func.func @transform_1(%arg0: i32) -> (i32, i32) {
    %c0_i32 = arith.constant 0 : i32
    %c0_i32_0 = arith.constant 0 : i32
    return %arg0, %c0_i32 : i32, i32
  }
  func.func @transform_2(%arg0: i32) -> (i32, i32) {
    %c0_i32 = arith.constant 0 : i32
    %c0_i32_0 = arith.constant 0 : i32
    %c0_i32_1 = arith.constant 0 : i32
    return %c0_i32, %c0_i32_0 : i32, i32
  }
  func.func @transform_3(%arg0: i32) -> (i32, i32) {
    %c0_i32 = arith.constant 0 : i32
    %c0_i32_0 = arith.constant 0 : i32
    return %arg0, %c0_i32 : i32, i32
  }
}

</mosaic_0001>

<bundles_post_ra>
// kernel: _clip_text_classifier_call.1
= control target key start
LH: loop header
LB: loop body
LE: loop exit
PB: predicated region body
PF: predicated region fallthrough
CT: control target
= control target key end

     0   :  { %s865_s0 = inlined_call_operand.<no memory space> [shape: f32[1], index: 0, kind: input, shape index: {}]   ;;  %s866_s1 = inlined_call_operand.hbm [shape: f32[12,128], index: 1, kind: input, shape index: {}]   ;;  %s867_s2 = inlined_call_operand.hbm [shape: bf16[128,128], index: 2, kind: input, shape index: {}]   ;;  %s868_s3 = inlined_call_operand.hbm [shape: bf16[12,128], index: 3, kind: output, shape index: {}]  }
   0x1   :  { %8 = sst [smem:[#allocation2]] %s865_s0 }
   0x2   :  { %9 = vsyncpa [#allocation4], 0 }
   0x3   :  { %11 = vsyncpa [#allocation4 + $0x1], 0 }
   0x4   :  { %12 = vsyncpa [#allocation7], 0 }
   0x5   :  { %13 = vsyncpa [#allocation5], 0 }
   0x6   :  { %15 = vsyncpa [#allocation5 + $0x1], 0  ;;  %s710_s14 = smov 0   ;;  %s712_s15 = smov 0  }
   0x7   :  { %s714_s16 = smov 0   ;;  %s716_s17 = smov 0  }
   0x8 LB: > { %s731_s0 = sadd.s32 4294967295, %s678_s17   ;;  %s428_s18 = sadd.s32 4294967294, %s678_s17   ;;  %s678_s17 = sphi %s716_s17, %s890_s17   ;;  %s674_s16 = sphi %s714_s16, %s889_s16   ;;  %s670_s15 = sphi %s712_s15, %s888_s15   ;;  %s666_s14 = sphi %s710_s14, %s887_s14  }
   0x9   : > { %p62_p0 = scmp.ne.s32.totalorder %s670_s15, %s666_s14  ;;  %p869_p1 = scmp.eq.s32.totalorder %s731_s0, 0 }
   0xa   : > { %p113_p3 = scmp.eq.s32.totalorder %s428_s18, 1  ;;  %p429_p5 = scmp.ge.s32.totalorder %s678_s17, 1 }
   0xb   : > { %p740_p4 = por %p869_p1, %p62_p0  ;;  %p120_p7 = scmp.lt.s32.totalorder %s678_s17, 3 }
   0xc   : > { %p745_p6 = por %p113_p3, %p62_p0  ;;  %s680_s22 = smov [#allocation6]  }
   0xd   : > { %s873_s19 = scalar_select %p740_p4, 1, 0 }
   0xe   : > { %s874_s20 = scalar_select %p745_p6, 1, 0 }
   0xf   : > { %p750_p8 = pnand %p429_p5, %p120_p7  ;;  %s135_s23 = sshll.u32 %s680_s22, 4  ;;  %s136_s23 = int_to_ptr.vmem [resolvable:$true] %s135_s23 }
  0x10   : > { %s764_s25 = sadd.s32 1, %s678_s17   ;;  %s49_s26 = sadd.s32 1, %s674_s16 }
  0x11   : > { %s875_s21 = scalar_select %p750_p8, 1, 0 }
  0x12   : > { %p487_p9 = pneg %p750_p8  ;;  %s46_s27 = ssub.s32 %s678_s17, %s764_s25 }
  0x13   : > { %s567_s28 = scalar_lea.vmem %s136_s23, 1024  ;;  %p575_p5 = scmp.lt.s32.totalorder %s136_s23, %s136_s23 }
  0x14   : > { %p759_p11 = pnand %p487_p9, %p869_p1  ;;  %p568_p13 = scmp.ne.s32.totalorder %s136_s23, %s567_s28 }
  0x15   : > { %p576_p7 = scmp.lt.s32.totalorder %s567_s28, %s567_s28 }
  0x16   : > { %p558_p12 = pneg %p759_p11 }
  0x17   : > { %p577_p10 = por %p576_p7, %p575_p5 }
  0x18   : > { %p570_p0 = pnand %p568_p13, %p558_p12 }
  0x1a   : > { %p571_p3 = pneg %p570_p0 }
  0x1c   : > { %p578_p2 = pnand %p577_p10, %p571_p3 }
  0x1e   : > { %581 = shalt.err (!%p578_p2)
}
  0x1f   : > { %s681_s29 = smov 64   ;;  %s682_s30 = smov 4  }
  0x20   : > { %490 = dma.hbm_to_vmem [thread:$0]  (!%p759_p11), %s867_s2, 1024, %s136_s23, [#allocation7], %s681_s29, %s681_s29, %s682_s30  }
  0x21   : > { %p47_p9 = scmp.eq.s32.totalorder %s46_s27, 0  ;;  %p56_p12 = scmp.ne.s32.totalorder %s674_s16, %s670_s15 }
  0x22   : > { %p57_p10 = scmp.eq.s32.totalorder %s678_s17, 0  ;;  %p500_p2 = scmp.lt.s32.totalorder %s678_s17, 2 }
  0x23   : > { %s781_s6 = scalar_select %p47_p9, %s674_s16, %s49_s26  }
  0x24   : > { %p58_p13 = por %p57_p10, %p56_p12  ;;  %p877_p0 = scmp.eq.s32.totalorder %s731_s0, 1 }
  0x25   : > { %s149_s8 = sand.u32 1, %s674_s16   ;;  %s433_s9 = sshll.u32 %s678_s17, 7 }
  0x26   : > { %p785_p3 = por %p877_p0, %p56_p12  ;;  %s432_s10 = sshll.u32 %s149_s8, 3 }
  0x27   : > { %s794_s13 = scalar_lea.hbm %s866_s1, %s433_s9  ;;  %s153_s18 = scalar_lea.vmem [#allocation3], %s432_s10 }
  0x28   : > { %s878_s7 = scalar_select %p785_p3, 1, 0 }
  0x29   : > { %s160_s22 = sshll.u32 %s153_s18, 4  ;;  %p796_p11 = pnand %p500_p2, %p58_p13  ;;  %s161_s22 = int_to_ptr.vmem [resolvable:$true] %s160_s22 }
  0x2a   : > { %s150_s24 = scalar_lea.sflag [#allocation4], %s149_s8  ;;  %s582_s26 = scalar_lea.hbm %s794_s13, 128 }
  0x2b   : > { %p583_p5 = scmp.ne.s32.totalorder %s794_s13, %s582_s26  ;;  %p584_p7 = pneg %p796_p11 }
  0x2c   : > { %s587_s29 = scalar_lea.hbm %s866_s1, 256  ;;  %p588_p10 = scmp.lt.s32.totalorder %s794_s13, %s866_s1 }
  0x2d   : > { %p585_p9 = pnand %p584_p7, %p583_p5  ;;  %p589_p2 = scmp.lt.s32.totalorder %s587_s29, %s582_s26 }
  0x2f   : > { %p586_p12 = pneg %p585_p9  ;;  %p590_p13 = por %p589_p2, %p588_p10 }
  0x31   : > { %p591_p0 = pnand %p590_p13, %p586_p12 }
  0x33   : > { %594 = shalt.err (!%p591_p0)
}
  0x34   : > { %s595_s5 = scalar_lea.vmem %s161_s22, 128  ;;  %s683_s8 = smov [#allocation3]  }
  0x35   : > { %p596_p1 = scmp.ne.s32.totalorder %s161_s22, %s595_s5  ;;  %s600_s9 = sshll.u32 %s683_s8, 4  ;;  %s601_s9 = int_to_ptr.vmem [resolvable:$false] %s600_s9 }
  0x36   : > { %s602_s10 = scalar_lea.vmem %s601_s9, 256  ;;  %p603_p5 = scmp.lt.s32.totalorder %s161_s22, %s601_s9 }
  0x37   : > { %p598_p6 = pnand %p596_p1, %p584_p7  ;;  %p604_p9 = scmp.lt.s32.totalorder %s602_s10, %s595_s5 }
  0x39   : > { %p599_p3 = pneg %p598_p6  ;;  %p605_p4 = por %p604_p9, %p603_p5 }
  0x3b   : > { %p606_p8 = pnand %p605_p4, %p599_p3 }
  0x3d   : > { %609 = shalt.err (!%p606_p8)
}
  0x3e   : > { %494 = dma.hbm_to_vmem [thread:$0]  (!%p796_p11), %s794_s13, 128, %s161_s22, %s150_s24  }
  0x3f   : > { %p880_p12 = scmp.ne.s32.totalorder %s875_s21, 0 }
  0x40   : > { %s817_s11 = sand.u32 (!%p880_p12), 1, %s670_s15   ;;  %p881_p1 = scmp.ne.s32.totalorder (!%p880_p12), %s873_s19, 0 }
  0x41   : > { %169 = sbr.rel (%p880_p12) target bundleno = 754 (0x2f2), region = 32  ;;  %s435_s12 = sshll.u32 (!%p880_p12), %s817_s11, 3 }
  0x42   : > { %s172_s18 = scalar_lea.sflag (!%p880_p12), [#allocation4], %s817_s11  ;;  %s175_s26 = scalar_lea.vmem (!%p880_p12), [#allocation3], %s435_s12 }
  0x46   : > { %653 = dma.done.wait (%p881_p1), %s172_s18, 128  }
  0x47   : > { %655 = vsyncadd (%p881_p1), %s172_s18, 4294967168  ;;  %p882_p4 = scmp.eq.s32.totalorder %s731_s0, 0 }
  0x49   : > { %657 = dma.done.wait (%p882_p4), [#allocation7], 1024   ;;  %p883_p6 = pmov %p882_p4 }
  0x4a   : > { %v684_v0 = vmov 0.0   ;;  %v203_v1 = vld [vmem:[%s175_s26] sm:$0xff]  ;;  %v542_v5 = vld [vmem:[#allocation6 + $0x28] sm:$0xff]   ;;  %v543_v6 = vld [vmem:[#allocation6 + $0x20] sm:$0xff]   ;;  %vm685_vm0 = vmmov 0   ;;  %s207_s19 = sld [smem:[#allocation2]]  ;;  %v319_v19 = vlaneseq }
  0x4b   : > { %659 = vsyncadd (%p883_p6), [#allocation7], 4294966272  ;;  %459 = vmatprep.subr.bf16.mxu0 %v684_v0  ;;  %v204_v2 = vmul.f32 %v203_v1, %v203_v1  ;;  %v540_v3 = vld [vmem:[#allocation6 + $0x38] sm:$0xff]   ;;  %v541_v4 = vld [vmem:[#allocation6 + $0x30] sm:$0xff]   ;;  %475 = vmatprep.mubr.msk.bf16.mxu0 %vm685_vm0, %v684_v0  ;;  %s437_s21 = sshll.u32 %s817_s11, 2  ;;  %s447_s13 = sshll.u32 %s731_s0, 6 }
  0x4c   : > { %460 = vmatpush3.bf16.msra.mxu0 %v540_v3  ;;  %v544_v7 = vld [vmem:[#allocation6 + $0x18] sm:$0xff]   ;;  %v545_v8 = vld [vmem:[#allocation6 + $0x10] sm:$0xff]   ;;  %v546_v9 = vld [vmem:[#allocation6 + $0x8] sm:$0xff]   ;;  %v320_v20 = vand.u32 127, %v319_v19  ;;  %s201_s22 = scalar_lea.vmem [#allocation8], %s437_s21  ;;  %s346_s28 = scalar_lea.hbm %s868_s3, %s447_s13 }
  0x4d   : > { %205 = vadd.xlane.f32.xlu0 %v204_v2  ;;  %461 = vmatprep.subr.bf16.mxu0 %v684_v0  ;;  %v547_v10 = vld [vmem:[#allocation6] sm:$0xff]   ;;  %s348_s23 = sshll.u32 %s201_s22, 4  ;;  %s335_s29 = scalar_lea.sflag [#allocation5], %s817_s11  ;;  %s349_s23 = int_to_ptr.vmem [resolvable:$true] %s348_s23 }
  0x4e   : > { %vm321_vm1 = vcmp.lt.s32.totalorder %v320_v20, 96  ;;  %s610_s30 = scalar_lea.vmem %s349_s23, 64  ;;  %p884_p3 = scmp.ne.s32.totalorder %s878_s7, 0 }
  0x4f   : > { %p611_p8 = scmp.ne.s32.totalorder %s349_s23, %s610_s30  ;;  %s686_s4 = smov [#allocation8]  }
  0x50   : > { %462 = vmatpush3.bf16.msra.mxu0 %v541_v4  ;;  %v208_v11 = vstv %s207_s19  ;;  %s614_s5 = sshll.u32 %s686_s4, 4  ;;  %s615_s5 = int_to_ptr.vmem [resolvable:$false] %s614_s5 }
  0x51   : > { %463 = vmatprep.subr.bf16.mxu0 %v684_v0  ;;  %v209_v12 = vmul.f32 1.442695, %v208_v11  ;;  %p612_p11 = pnand %p611_p8, %p884_p3  ;;  %s616_s0 = scalar_lea.vmem %s615_s5, 128 }
  0x52   : > { %p617_p10 = scmp.lt.s32.totalorder %s349_s23, %s615_s5  ;;  %p618_p2 = scmp.lt.s32.totalorder %s616_s0, %s610_s30 }
  0x53   : > { %548 = vpow2.f32 %v209_v12  ;;  %p613_p7 = pneg %p612_p11 }
  0x54   : > { %464 = vmatpush3.bf16.msra.mxu0 %v542_v5  ;;  %p619_p13 = por %p618_p2, %p617_p10 }
  0x55   : > { %465 = vmatprep.subr.bf16.mxu0 %v684_v0 }
  0x56   : > { %p620_p0 = pnand %p619_p13, %p613_p7 }
  0x58   : > { %466 = vmatpush3.bf16.msra.mxu0 %v543_v6 }
  0x59   : > { %467 = vmatprep.subr.bf16.mxu0 %v684_v0 }
  0x5c   : > { %468 = vmatpush3.bf16.msra.mxu0 %v544_v7 }
  0x5d   : > { %469 = vmatprep.subr.bf16.mxu0 %v684_v0 }
  0x60   : > { %470 = vmatpush3.bf16.msra.mxu0 %v545_v8  ;;  %v549_v14 = vpop.eup %548 }
  0x61   : > { %471 = vmatprep.subr.bf16.mxu0 %v684_v0 }
  0x64   : > { %472 = vmatpush3.bf16.msra.mxu0 %v546_v9 }
  0x65   : > { %473 = vmatprep.subr.bf16.mxu0 %v684_v0 }
  0x68   : > { %474 = vmatpush3.bf16.msra.mxu0 %v547_v10 }
  0xd6   : > { %v206_v13 = vpop.xlane.xlu0 %205 }
  0xd7   : > { %550 = vrsqrt.f32 %v206_v13 }
  0xe4   : > { %v551_v15 = vpop.eup %550 }
  0xe5   : > { %v212_v16 = vmul.f32 %v551_v15, %v549_v14 }
  0xe7   : > { %v213_v17 = vmul.f32 %v212_v16, %v203_v1 }
  0xe9   : > { %v214_v18 = vpack.c.bf16 %v213_v17, %v213_v17 }
  0xeb   : > { %476 = vmatmul.mubr.bf16.vlgmr.msra.gmra.mxu0 %v214_v18 }
 0x1ab   : > { %v313_v21 = vpop.f32.mrf.mxu0 }
 0x1ac   : > { %v322_v22 = vsel %vm321_vm1, %v313_v21, -inf }
 0x1ad   : > { %323 = vmax.xlane.f32.xlu0 %v322_v22  ;;  %v477_v23 = vpop.f32.mrf.mxu0 }
 0x1af   : > { %v316_v24 = vpop.f32.mrf.mxu0 }
 0x1b1   : > { %v478_v25 = vpop.f32.mrf.mxu0 }
 0x236   : > { %v324_v26 = vpop.xlane.xlu0 %323 }
 0x237   : > { %v325_v27 = vsub.f32 %v322_v22, %v324_v26 }
 0x239   : > { %v326_v28 = vmul.f32 1.442695, %v325_v27 }
 0x23b   : > { %552 = vpow2.f32 %v326_v28 }
 0x248   : > { %v553_v29 = vpop.eup %552 }
 0x249   : > { %328 = vadd.xlane.f32.xlu1 %v553_v29 }
 0x2d2   : > { %v329_v30 = vpop.xlane.xlu1 %328 }
 0x2d3   : > { %554 = vrcp.f32 %v329_v30 }
 0x2e0   : > { %v555_v31 = vpop.eup %554 }
 0x2e1   : > { %v331_v32 = vmul.f32 %v555_v31, %v553_v29 }
 0x2e3   : > { %v332_v33 = vpack.c.bf16 %v331_v32, %v331_v32 }
 0x2e5   : > { %333 = vst [vmem:[%s201_s22] sm:$0xf] %v332_v33 }
 0x2e6   : > { %623 = shalt.err (!%p620_p0)
}
 0x2e7   : > { %s624_s8 = scalar_lea.hbm %s346_s28, 64  ;;  %s628_s11 = scalar_lea.hbm %s868_s3, 128 }
 0x2e8   : > { %p625_p5 = scmp.ne.s32.totalorder %s346_s28, %s624_s8  ;;  %p629_p1 = scmp.lt.s32.totalorder %s346_s28, %s868_s3 }
 0x2e9   : > { %p630_p4 = scmp.lt.s32.totalorder %s628_s11, %s624_s8 }
 0x2ea   : > { %p626_p9 = pnand %p625_p5, %p884_p3 }
 0x2eb   : > { %p631_p6 = por %p630_p4, %p629_p1 }
 0x2ec   : > { %p627_p12 = pneg %p626_p9 }
 0x2ee   : > { %p632_p8 = pnand %p631_p6, %p627_p12 }
 0x2f0   : > { %635 = shalt.err (!%p632_p8)
}
 0x2f1   : > { %485 = dma.vmem_to_hbm [thread:$0]  (%p884_p3), %s349_s23, 64, %s346_s28, %s335_s29  }
 0x2f2 PF: > { %s360_s26 = sand.u32 1, %s666_s14   ;;  %p885_p11 = scmp.ne.s32.totalorder %s874_s20, 0 }
 0x2f3   : > { %p886_p7 = scmp.ge.s32.totalorder %s678_s17, 2  ;;  %s361_s19 = scalar_lea.sflag [#allocation5], %s360_s26 }
 0x2f5   : > { %p496_p10 = pnand %p886_p7, %p885_p11 }
 0x2f7   : > { %p497_p2 = pneg %p496_p10 }
 0x2f9   : > { %661 = dma.done.wait (%p497_p2), %s361_s19, 64  }
 0x2fa   : > { %663 = vsyncadd (%p497_p2), %s361_s19, 4294967232  ;;  %p18_p13 = scmp.ge.s32.totalorder %s764_s25, 4   ;;  %s887_s14 = smov %s670_s15 }
 0x2fb   : > { %s888_s15 = smov %s674_s16  ;;  %s889_s16 = smov %s781_s6 }
 0x2fc   : > { %s890_s17 = smov %s764_s25  ;;  %20 = sbr.rel (!%p18_p13) target bundleno = 8 (0x8), region = 81 }
 0x301   :  { %366 = vsyncpa [#allocation4], 1 }
 0x302   :  { %368 = vsyncpa [#allocation4 + $0x1], 1 }
 0x303   :  { %369 = vsyncpa [#allocation7], 1 }
 0x304   :  { %370 = vsyncpa [#allocation5], 1 }
 0x305   :  { %372 = vsyncpa [#allocation5 + $0x1], 1 }

</bundles_post_ra>
